<compile_context>
chip_gen: v5e
topology: v5e:2x2
jax: 0.10.0
libtpu: 0.0.40
codegen_flags: <defaults>
</compile_context>

<pallas_src>
import functools

import jax
import jax.numpy as jnp
from jax import lax
from jax.experimental import pallas as pl
from jax.experimental.pallas import tpu as pltpu


def _round_up(x, m):
    return (x + m - 1) // m * m


def _vmem_capacity_bytes():
    """Physical VMEM per TensorCore; conservative fallback = v7x (64 MiB)."""
    try:
        return int(pltpu.get_tpu_info().vmem_capacity_bytes)
    except Exception:
        return 64 * 1024 * 1024


def _single_buffered_spec(block_shape, index_map):
    """BlockSpec for a grid-resident operand (constant index_map): single
    buffer so the weight/bias is not pointlessly double-buffered in VMEM."""
    try:
        return pl.BlockSpec(block_shape, index_map, pipeline_mode=pl.Buffered(1))
    except Exception:  # older jax without pipeline_mode -> default buffering
        return pl.BlockSpec(block_shape, index_map)


# ---------------------------------------------------------------------------
# Kernels
# ---------------------------------------------------------------------------

def _make_resident_kernel(apply_l2norm: bool):
    """V fully VMEM-resident; one MXU dot per batch tile."""
    def kernel(img_ref, v_ref, b_ref, out_ref):
        # img_ref: (TM, Kp)   v_ref: (Ep, Kp) scale pre-folded   b_ref: (1, Ep)
        # Contract the shared last dims: (TM,K)x(E,K)->(TM,E); no V transpose.
        raw = lax.dot_general(
            img_ref[...], v_ref[...],
            dimension_numbers=(((1,), (1,)), ((), ())),
            preferred_element_type=jnp.float32)
        feats = raw + b_ref[...]
        if apply_l2norm:
            sumsq = jnp.sum(feats * feats, axis=-1, keepdims=True)
            # exact x / (||x|| + 1e-8) semantics (approx=False for f32 parity)
            inv = pl.reciprocal(jnp.sqrt(sumsq) + 1e-8, approx=False)
            feats = feats * inv
        out_ref[...] = feats.astype(out_ref.dtype)
    return kernel


def _make_kstream_kernel(apply_l2norm: bool):
    """V streamed in (Ep, tk) slabs with an f32 accumulator; epilogue on last k."""
    def kernel(img_ref, v_ref, b_ref, out_ref, acc_ref):
        k = pl.program_id(1)

        @pl.when(k == 0)
        def _():
            acc_ref[...] = jnp.zeros_like(acc_ref)

        acc_ref[...] += lax.dot_general(
            img_ref[...], v_ref[...],
            dimension_numbers=(((1,), (1,)), ((), ())),
            preferred_element_type=jnp.float32)

        @pl.when(k == pl.num_programs(1) - 1)
        def _():
            feats = acc_ref[...] + b_ref[...]
            if apply_l2norm:
                sumsq = jnp.sum(feats * feats, axis=-1, keepdims=True)
                inv = pl.reciprocal(jnp.sqrt(sumsq) + 1e-8, approx=False)
                feats = feats * inv
            out_ref[...] = feats.astype(out_ref.dtype)
    return kernel


# ---------------------------------------------------------------------------
# Wrapper
# ---------------------------------------------------------------------------

@functools.partial(
    jax.jit,
    static_argnames=("no_imgnorm", "tm", "tk", "use_bf16", "force_k_stream"))
def encoder_image_weight_norm_precomp(images, v, g, b, *, no_imgnorm=False,
                                      tm=None, tk=None, use_bf16=False,
                                      force_k_stream=False):
    """images: (B, img_dim); v: (embed, img_dim); g: scalar; b: (embed,)."""
    B, img_dim = images.shape
    embed = v.shape[0]

    in_dtype = jnp.bfloat16 if use_bf16 else jnp.float32
    itemsize = 2 if use_bf16 else 4
    sub = 16 if use_bf16 else 8          # sublane granularity for the batch tile

    # Lane-dense padding of the contracted / output feature dims; zero columns
    # do not perturb the matmul or the l2norm and are sliced off at the end.
    Kp = _round_up(img_dim, 128)
    Ep = _round_up(embed, 128)

    vmem_cap = _vmem_capacity_bytes()
    budget = int(vmem_cap * 0.72)        # working-set budget (leave headroom)

    # Batch tile: big tiles amortize the ~0.35us/step pipeline overhead, but
    # keep >=2 balanced grid steps when B allows so the parallel batch axis can
    # shard across both v7x TensorCores.
    if tm is None:
        tm = min(512, _round_up(B, sub))
        if B >= 2 * sub:
            tm = min(tm, _round_up((B + 1) // 2, sub))

    def resident_bytes(tm_):
        return (Ep * Kp * itemsize          # V, single-buffered (Buffered(1))
                + Ep * 4                    # bias, single-buffered
                + 2 * tm_ * Kp * itemsize   # image tile, double-buffered
                + 2 * tm_ * Ep * 4)         # out tile, double-buffered

    def stream_bytes(tm_, tk_):
        return (2 * Ep * tk_ * itemsize     # V slab, double-buffered
                + Ep * 4
                + 2 * tm_ * tk_ * itemsize
                + 2 * tm_ * Ep * 4
                + tm_ * Ep * 4)             # f32 accumulator scratch

    use_stream = bool(force_k_stream)
    if not use_stream:
        # try to keep V resident by first shrinking the batch tile a bit
        while resident_bytes(tm) > budget and tm > 8 * sub:
            tm = _round_up(tm // 2, sub)
        use_stream = resident_bytes(tm) > budget

    if use_stream:
        if tk is None:
            tk = next(c for c in (1024, 512, 256, 128) if Kp % c == 0)
        if Kp % tk != 0:
            raise ValueError(f"tk={tk} must divide padded img_dim {Kp}")
        while stream_bytes(tm, tk) > budget and tk > 128:
            tk //= 2
        while stream_bytes(tm, tk) > budget and tm > sub:
            tm = _round_up(tm // 2, sub)

    Bp = _round_up(B, tm)
    n_btiles = Bp // tm

    # weight_norm (dim=None) scale folded into the weight itself; XLA fuses the
    # scalar multiply into the padded-weight materialization for free.
    scale = jnp.asarray(g, jnp.float32) / jnp.sqrt(
        jnp.sum(jnp.square(v.astype(jnp.float32))))
    v_scaled = v.astype(jnp.float32) * scale

    images_p = jnp.pad(images.astype(jnp.float32),
                       ((0, Bp - B), (0, Kp - img_dim))).astype(in_dtype)
    v_p = jnp.pad(v_scaled, ((0, Ep - embed), (0, Kp - img_dim))).astype(in_dtype)
    b_p = jnp.pad(b.astype(jnp.float32), (0, Ep - embed)).reshape((1, Ep))

    footprint = stream_bytes(tm, tk) if use_stream else resident_bytes(tm)
    vmem_limit = max(32 * 1024 * 1024,
                     min(int(vmem_cap * 0.85),
                         int(footprint) + 8 * 1024 * 1024))

    weight_reads = n_btiles if use_stream else 1
    cost = pl.CostEstimate(
        flops=2 * Bp * Kp * Ep,
        transcendentals=0 if no_imgnorm else 2 * Bp,
        bytes_accessed=(Bp * Kp * itemsize + Ep * Kp * itemsize * weight_reads
                        + Ep * 4 + Bp * Ep * 4),
    )

    if not use_stream:
        kernel = _make_resident_kernel(apply_l2norm=not no_imgnorm)
        grid = (n_btiles,)
        in_specs = [
            pl.BlockSpec((tm, Kp), lambda i: (i, 0)),             # images tile
            _single_buffered_spec((Ep, Kp), lambda i: (0, 0)),    # V (resident)
            _single_buffered_spec((1, Ep), lambda i: (0, 0)),     # bias (resident)
        ]
        out_specs = pl.BlockSpec((tm, Ep), lambda i: (i, 0))
        scratch_shapes = []
        dim_sem = ("parallel",)
    else:
        kernel = _make_kstream_kernel(apply_l2norm=not no_imgnorm)
        grid = (n_btiles, Kp // tk)
        in_specs = [
            pl.BlockSpec((tm, tk), lambda i, k: (i, k)),          # images tile
            pl.BlockSpec((Ep, tk), lambda i, k: (0, k)),          # V slab
            _single_buffered_spec((1, Ep), lambda i, k: (0, 0)),  # bias (resident)
        ]
        out_specs = pl.BlockSpec((tm, Ep), lambda i, k: (i, 0))
        scratch_shapes = [pltpu.VMEM((tm, Ep), jnp.float32)]
        dim_sem = ("parallel", "arbitrary")

    out = pl.pallas_call(
        kernel,
        out_shape=jax.ShapeDtypeStruct((Bp, Ep), jnp.float32),
        grid_spec=pltpu.PrefetchScalarGridSpec(
            num_scalar_prefetch=0,
            grid=grid,
            in_specs=in_specs,
            out_specs=out_specs,
            scratch_shapes=scratch_shapes,
        ),
        compiler_params=pltpu.CompilerParams(
            dimension_semantics=dim_sem,
            vmem_limit_bytes=vmem_limit),
        cost_estimate=cost,
    )(images_p, v_p, b_p)

    return out[:B, :embed]


if __name__ == "__main__":
    # Deterministic synthetic parameters & inputs (no checkpoint loading).
    key = jax.random.PRNGKey(0)
    k_img, k_v, k_b = jax.random.split(key, 3)

    batch = 16
    img_dim = 256
    embed_size = 128

    images = jax.random.normal(k_img, (batch, img_dim), dtype=jnp.float32)
    v = jax.random.normal(k_v, (embed_size, img_dim), dtype=jnp.float32) * 0.1
    b = jax.random.normal(k_b, (embed_size,), dtype=jnp.float32) * 0.01
    # weight_norm init sets g = ||V||_F (dim=None => norm over the whole tensor)
    g = jnp.sqrt(jnp.sum(v * v))

    # f32 reference
    w_ref = v * (g / jnp.sqrt(jnp.sum(v * v)))
    feats_lin = jnp.dot(images, w_ref.T,
                        precision=jax.lax.Precision.HIGHEST) + b
    feats_ref = feats_lin / (
        jnp.sqrt(jnp.sum(feats_lin * feats_lin, axis=-1, keepdims=True)) + 1e-8)

    # --- default path: resident V, l2norm applied ---
    out = jax.block_until_ready(
        encoder_image_weight_norm_precomp(images, v, g, b))
    assert out.shape == (batch, embed_size)
    assert jnp.max(jnp.abs(out - feats_ref)) < 1e-4

    # --- no_imgnorm=True path (no l2norm) ---
    out_raw = jax.block_until_ready(
        encoder_image_weight_norm_precomp(images, v, g, b, no_imgnorm=True))
    assert out_raw.shape == (batch, embed_size)
    assert jnp.max(jnp.abs(out_raw - feats_lin)) < 1e-4

    # --- K-streaming path (auto-selected when V is too big to stay resident;
    #     forced here so the small test exercises it, grid=(2, 2)) ---
    out_ks = jax.block_until_ready(
        encoder_image_weight_norm_precomp(images, v, g, b,
                                          force_k_stream=True, tk=128))
    assert out_ks.shape == (batch, embed_size)
    assert jnp.max(jnp.abs(out_ks - feats_ref)) < 1e-4

    # --- bf16 MXU path (higher throughput, looser numerics) ---
    out_bf = jax.block_until_ready(
        encoder_image_weight_norm_precomp(images, v, g, b, use_bf16=True))
    assert out_bf.shape == (batch, embed_size)
    assert jnp.max(jnp.abs(out_bf - feats_ref)) < 3e-2

    print("KERNEL_OK")
</pallas_src>

<mosaic_0001>
module attributes {stable_mosaic.version = 11 : i64} {
  func.func @kernel(%arg0: i32, %arg1: memref<8x256xf32, #tpu.memory_space<vmem>>, %arg2: memref<128x256xf32, #tpu.memory_space<vmem>>, %arg3: memref<1x128xf32, #tpu.memory_space<vmem>>, %arg4: memref<8x128xf32, #tpu.memory_space<vmem>>) attributes {dimension_semantics = [#tpu.dimension_semantics<parallel>], iteration_bounds = array<i64: 2>, scalar_prefetch = 0 : i64, scratch_operands = 0 : i64, tpu.core_type = #tpu.core_type<tc>, window_params = [{transform_indices = @transform_0, window_bounds = array<i64: 8, 256>}, {pipeline_mode = #tpu.pipeline_mode<synchronous>, transform_indices = @transform_1, window_bounds = array<i64: 128, 256>}, {pipeline_mode = #tpu.pipeline_mode<synchronous>, transform_indices = @transform_2, window_bounds = array<i64: 1, 128>}, {transform_indices = @transform_3, window_bounds = array<i64: 8, 128>}]} {
    %c0 = arith.constant 0 : index
    %c0_0 = arith.constant 0 : index
    %0 = vector.load %arg1[%c0, %c0_0] : memref<8x256xf32, #tpu.memory_space<vmem>>, vector<8x256xf32>
    %c0_1 = arith.constant 0 : index
    %c0_2 = arith.constant 0 : index
    %1 = vector.load %arg2[%c0_1, %c0_2] : memref<128x256xf32, #tpu.memory_space<vmem>>, vector<128x256xf32>
    %cst = arith.constant dense<0.000000e+00> : vector<8x128xf32>
    %2 = tpu.matmul %0, %1, %cst {dimension_numbers = #tpu.dot_dimension_numbers<[1], [1], [0], [0], [0, 0, 1, 0], [], []>} : vector<8x256xf32>, vector<128x256xf32>, vector<8x128xf32> -> vector<8x128xf32>
    %c0_3 = arith.constant 0 : index
    %c0_4 = arith.constant 0 : index
    %3 = vector.load %arg3[%c0_3, %c0_4] : memref<1x128xf32, #tpu.memory_space<vmem>>, vector<1x128xf32>
    %4 = vector.broadcast %3 : vector<1x128xf32> to vector<8x128xf32>
    %5 = arith.addf %2, %4 : vector<8x128xf32>
    %6 = arith.mulf %5, %5 : vector<8x128xf32>
    %cst_5 = arith.constant dense<0.000000e+00> : vector<8xf32>
    %7 = vector.multi_reduction <add>, %6, %cst_5 [1] : vector<8x128xf32> to vector<8xf32>
    %8 = vector.shape_cast %7 : vector<8xf32> to vector<8x1xf32>
    %9 = math.sqrt %8 : vector<8x1xf32>
    %cst_6 = arith.constant 9.99999993E-9 : f32
    %10 = vector.broadcast %cst_6 : f32 to vector<8x1xf32>
    %11 = arith.addf %9, %10 : vector<8x1xf32>
    %12 = tpu.reciprocal %11 : vector<8x1xf32> -> vector<8x1xf32>
    %13 = vector.broadcast %12 : vector<8x1xf32> to vector<8x128xf32>
    %14 = arith.mulf %5, %13 : vector<8x128xf32>
    %c0_7 = arith.constant 0 : index
    %c0_8 = arith.constant 0 : index
    %15 = vector.load %arg4[%c0_7, %c0_8] : memref<8x128xf32, #tpu.memory_space<vmem>>, vector<8x128xf32>
    tpu.vector_store %arg4[%c0_7, %c0_8], %14 {strides = array<i32>} : memref<8x128xf32, #tpu.memory_space<vmem>>, vector<8x128xf32>,
    return
  }
  func.func @transform_0(%arg0: i32) -> (i32, i32) {
    %c0_i32 = arith.constant 0 : i32
    %c0_i32_0 = arith.constant 0 : i32
    return %arg0, %c0_i32 : i32, i32
  }
  func.func @transform_1(%arg0: i32) -> (i32, i32) {
    %c0_i32 = arith.constant 0 : i32
    %c0_i32_0 = arith.constant 0 : i32
    %c0_i32_1 = arith.constant 0 : i32
    return %c0_i32, %c0_i32_0 : i32, i32
  }
  func.func @transform_2(%arg0: i32) -> (i32, i32) {
    %c0_i32 = arith.constant 0 : i32
    %c0_i32_0 = arith.constant 0 : i32
    %c0_i32_1 = arith.constant 0 : i32
    return %c0_i32, %c0_i32_0 : i32, i32
  }
  func.func @transform_3(%arg0: i32) -> (i32, i32) {
    %c0_i32 = arith.constant 0 : i32
    %c0_i32_0 = arith.constant 0 : i32
    return %arg0, %c0_i32 : i32, i32
  }
}

</mosaic_0001>

<bundles_post_ra>
// kernel: encoder_image_weight_norm_precomp.1
= control target key start
LH: loop header
LB: loop body
LE: loop exit
PB: predicated region body
PF: predicated region fallthrough
CT: control target
= control target key end

     0   :  { %8 = vsyncpa [#allocation3], 0  ;;  %s678_s0 = inlined_call_operand.vmem [shape: f32[16,256], index: 0, kind: input, shape index: {}]   ;;  %s679_s1 = inlined_call_operand.vmem [shape: f32[128,256], index: 1, kind: input, shape index: {}]   ;;  %s680_s2 = inlined_call_operand.vmem [shape: f32[1,128], index: 2, kind: input, shape index: {}]   ;;  %s681_s3 = inlined_call_operand.hbm [shape: f32[16,128], index: 3, kind: output, shape index: {}]  }
   0x1   :  { %10 = vsyncpa [#allocation3 + $0x1], 0  ;;  %s494_s12 = smov 0   ;;  %s496_s13 = smov 0  }
   0x2   :  { %s498_s14 = smov 0   ;;  %s500_s15 = smov 0  }
   0x3 LB: > { %s515_s16 = sadd.s32 4294967295, %s472_s15   ;;  %s354_s17 = sadd.s32 4294967294, %s472_s15   ;;  %s472_s15 = sphi %s500_s15, %s687_s15   ;;  %s468_s14 = sphi %s498_s14, %s686_s14   ;;  %s464_s13 = sphi %s496_s13, %s685_s13   ;;  %s460_s12 = sphi %s494_s12, %s684_s12  }
   0x4   : > { %s519_s18 = sadd.s32 1, %s472_s15   ;;  %s91_s19 = sadd.s32 1, %s468_s14 }
   0x5   : > { %s88_s20 = ssub.s32 %s472_s15, %s519_s18  ;;  %p101_p0 = scmp.ne.s32.totalorder %s468_s14, %s464_s13 }
   0x6   : > { %p89_p1 = scmp.eq.s32.totalorder %s88_s20, 0  ;;  %p102_p2 = scmp.eq.s32.totalorder %s515_s16, 1 }
   0x7   : > { %p107_p3 = scmp.ne.s32.totalorder %s464_s13, %s460_s12  ;;  %p108_p4 = scmp.eq.s32.totalorder %s354_s17, 1 }
   0x8   : > { %s530_s21 = scalar_select %p89_p1, %s468_s14, %s91_s19  }
   0x9   : > { %p532_p5 = por %p102_p2, %p101_p0  ;;  %p536_p6 = por %p108_p4, %p107_p3 }
   0xa   : > { %p357_p7 = scmp.ge.s32.totalorder %s472_s15, 1  ;;  %p140_p8 = scmp.lt.s32.totalorder %s472_s15, 3 }
   0xc   : > { %p141_p9 = pnand %p357_p7, %p140_p8 }
   0xd   : > { %p164_p10 = scmp.lt.s32.totalorder (!%p141_p9), %s515_s16, 1  ;;  %s161_s20 = sand.u32 (!%p141_p9), 1, %s464_s13  }
   0xe   : > { %144 = sbr.rel (%p141_p9) target bundleno = 376 (0x178), region = 32  ;;  %s358_s24 = sshll.u32 (!%p141_p9), %s161_s20, 3 }
   0xf   : > { %s362_s25 = sshll.u32 (!%p141_p9), %s515_s16, 3  ;;  %s163_s29 = scalar_lea.vmem (!%p141_p9), [#allocation2], %s358_s24 }
  0x10   : > { %s290_s28 = scalar_lea.hbm (!%p141_p9), %s681_s3, %s362_s25  ;;  %s292_s30 = sshll.u32 (!%p141_p9), %s163_s29, 4  ;;  %s293_s30 = int_to_ptr.vmem [resolvable:$true] %s292_s30 }
  0x11   : > { %s430_s9 = scalar_lea.hbm (!%p141_p9), %s681_s3, 16 }
  0x13   : > { %v201_v0 = vld [vmem:[%s679_s1 + $0xf0] sm:$0xff]  ;;  %v202_v1 = vld [vmem:[%s679_s1 + $0xf8] sm:$0xff]  ;;  %v199_v2 = vld [vmem:[%s679_s1 + $0xe0] sm:$0xff]  ;;  %s165_s26 = scalar_select %p164_p10, %s515_s16, 1 }
  0x14   : > { %207 = vmatpush.xpose.msra.mxu0 %v201_v0  ;;  %227 = vmatpush.xpose.msra.mxu1 %v202_v1  ;;  %v200_v3 = vld [vmem:[%s679_s1 + $0xe8] sm:$0xff]  ;;  %v197_v4 = vld [vmem:[%s679_s1 + $0xd0] sm:$0xff]  ;;  %v198_v5 = vld [vmem:[%s679_s1 + $0xd8] sm:$0xff]  ;;  %s280_s16 = scalar_lea.sflag [#allocation3], %s161_s20 }
  0x15   : > { %v195_v6 = vld [vmem:[%s679_s1 + $0xc0] sm:$0xff]  ;;  %v196_v7 = vld [vmem:[%s679_s1 + $0xc8] sm:$0xff]  ;;  %v193_v8 = vld [vmem:[%s679_s1 + $0xb0] sm:$0xff]  ;;  %s365_s4 = sshll.u32 %s165_s26, 4 }
  0x16   : > { %v194_v9 = vld [vmem:[%s679_s1 + $0xb8] sm:$0xff]  ;;  %v191_v10 = vld [vmem:[%s679_s1 + $0xa0] sm:$0xff]  ;;  %v192_v11 = vld [vmem:[%s679_s1 + $0xa8] sm:$0xff]  ;;  %s168_s11 = scalar_lea.vmem %s678_s0, %s365_s4  ;;  %s294_s4 = sshll.u32 %s290_s28, 4  ;;  %s295_s4 = int_to_ptr.hbm [resolvable:$true] %s294_s4 }
  0x17   : > { %v189_v12 = vld [vmem:[%s679_s1 + $0x90] sm:$0xff]  ;;  %v190_v13 = vld [vmem:[%s679_s1 + $0x98] sm:$0xff]  ;;  %v187_v14 = vld [vmem:[%s679_s1 + $0x80] sm:$0xff]  ;;  %s424_s5 = sshra.s32 %s295_s4, 4  ;;  %s425_s5 = int_to_ptr.hbm [resolvable:$true] %s424_s5 }
  0x18   : > { %208 = vmatpush.xpose.msra.mxu0 %v199_v2  ;;  %228 = vmatpush.xpose.msra.mxu1 %v200_v3  ;;  %v188_v15 = vld [vmem:[%s679_s1 + $0x88] sm:$0xff]  ;;  %v185_v16 = vld [vmem:[%s679_s1 + $0x70] sm:$0xff]  ;;  %v186_v17 = vld [vmem:[%s679_s1 + $0x78] sm:$0xff]  ;;  %s426_s6 = scalar_lea.hbm %s425_s5, 8  ;;  %p431_p0 = scmp.lt.s32.totalorder %s425_s5, %s681_s3 }
  0x19   : > { %v183_v18 = vld [vmem:[%s679_s1 + $0x60] sm:$0xff]  ;;  %v184_v19 = vld [vmem:[%s679_s1 + $0x68] sm:$0xff]  ;;  %v181_v20 = vld [vmem:[%s679_s1 + $0x50] sm:$0xff]  ;;  %p427_p11 = scmp.ne.s32.totalorder %s425_s5, %s426_s6  ;;  %p432_p1 = scmp.lt.s32.totalorder %s430_s9, %s426_s6 }
  0x1a   : > { %v182_v21 = vld [vmem:[%s679_s1 + $0x58] sm:$0xff]  ;;  %v179_v22 = vld [vmem:[%s679_s1 + $0x40] sm:$0xff]  ;;  %v180_v23 = vld [vmem:[%s679_s1 + $0x48] sm:$0xff] }
  0x1b   : > { %v177_v24 = vld [vmem:[%s679_s1 + $0x30] sm:$0xff]  ;;  %v178_v25 = vld [vmem:[%s679_s1 + $0x38] sm:$0xff]  ;;  %v175_v26 = vld [vmem:[%s679_s1 + $0x20] sm:$0xff]  ;;  %p428_p12 = pnand %p427_p11, %p532_p5  ;;  %p433_p2 = por %p432_p1, %p431_p0 }
  0x1c   : > { %209 = vmatpush.xpose.msra.mxu0 %v197_v4  ;;  %229 = vmatpush.xpose.msra.mxu1 %v198_v5  ;;  %v176_v27 = vld [vmem:[%s679_s1 + $0x28] sm:$0xff]  ;;  %v173_v28 = vld [vmem:[%s679_s1 + $0x10] sm:$0xff]  ;;  %v174_v29 = vld [vmem:[%s679_s1 + $0x18] sm:$0xff] }
  0x1d   : > { %v171_v30 = vld [vmem:[%s679_s1] sm:$0xff]  ;;  %v172_v31 = vld [vmem:[%s679_s1 + $0x8] sm:$0xff]  ;;  %p429_p13 = pneg %p428_p12 }
  0x1e   : > { %v169_v32 = vld [vmem:[%s168_s11] sm:$0xff]  ;;  %v170_v33 = vld [vmem:[%s168_s11 + $0x8] sm:$0xff] }
  0x1f   : > { %v405_v34 = vld [vmem:[%s680_s2] ss:$0 sm:$0xff]  ;;  %p434_p3 = pnand %p433_p2, %p429_p13 }
  0x20   : > { %210 = vmatpush.xpose.msra.mxu0 %v195_v6  ;;  %230 = vmatpush.xpose.msra.mxu1 %v196_v7 }
  0x24   : > { %211 = vmatpush.xpose.msra.mxu0 %v193_v8  ;;  %231 = vmatpush.xpose.msra.mxu1 %v194_v9 }
  0x28   : > { %212 = vmatpush.xpose.msra.mxu0 %v191_v10  ;;  %232 = vmatpush.xpose.msra.mxu1 %v192_v11 }
  0x2c   : > { %213 = vmatpush.xpose.msra.mxu0 %v189_v12  ;;  %233 = vmatpush.xpose.msra.mxu1 %v190_v13 }
  0x30   : > { %214 = vmatpush.xpose.msra.mxu0 %v187_v14  ;;  %234 = vmatpush.xpose.msra.mxu1 %v188_v15 }
  0x34   : > { %215 = vmatpush.xpose.msra.mxu0 %v185_v16  ;;  %235 = vmatpush.xpose.msra.mxu1 %v186_v17 }
  0x38   : > { %216 = vmatpush.xpose.msra.mxu0 %v183_v18  ;;  %236 = vmatpush.xpose.msra.mxu1 %v184_v19 }
  0x3c   : > { %217 = vmatpush.xpose.msra.mxu0 %v181_v20  ;;  %237 = vmatpush.xpose.msra.mxu1 %v182_v21 }
  0x40   : > { %218 = vmatpush.xpose.msra.mxu0 %v179_v22  ;;  %238 = vmatpush.xpose.msra.mxu1 %v180_v23 }
  0x44   : > { %219 = vmatpush.xpose.msra.mxu0 %v177_v24  ;;  %239 = vmatpush.xpose.msra.mxu1 %v178_v25 }
  0x48   : > { %220 = vmatpush.xpose.msra.mxu0 %v175_v26  ;;  %240 = vmatpush.xpose.msra.mxu1 %v176_v27 }
  0x4c   : > { %221 = vmatpush.xpose.msra.mxu0 %v173_v28  ;;  %241 = vmatpush.xpose.msra.mxu1 %v174_v29 }
  0x50   : > { %222 = vmatpush.xpose.msra.mxu0 %v171_v30  ;;  %242 = vmatpush.xpose.msra.mxu1 %v172_v31 }
  0x53   : > { %223 = vmatmul.f32.vlgmr.msra.gmra.mxu0 %v169_v32  ;;  %243 = vmatmul.f32.vlgmr.msra.gmra.mxu1 %v170_v33 }
  0xd0   : > { %v224_v35 = vpop.f32.mrf.mxu0  ;;  %v244_v36 = vpop.f32.mrf.mxu1 }
  0xd1   : > { %v225_v37 = vadd.f32 %v405_v34, %v224_v35 }
  0xd3   : > { %v245_v38 = vadd.f32 %v244_v36, %v225_v37 }
  0xd5   : > { %v247_v39 = vmul.f32 %v245_v38, %v245_v38 }
  0xd7   : > { %248 = vadd.xlane.f32.xlu0 %v247_v39 }
 0x14a   : > { %v249_v40 = vpop.xlane.xlu0 %248 }
 0x14b   : > { %406 = vrsqrt.f32 %v249_v40  ;;  %vm257_vm0 = vcmp.eq.f32.partialorder %v249_v40, inf  ;;  %v260_v48 = vand.u32 2147483648, %v249_v40  ;;  %vm259_vm1 = vcmp.eq.f32.partialorder %v249_v40, 0.0 }
 0x151   : > { %v407_v41 = vpop.eup %406 }
 0x152   : > { %v251_v42 = vmul.f32 %v407_v41, %v249_v40 }
 0x154   : > { %v252_v43 = vmul.f32 %v407_v41, %v251_v42 }
 0x156   : > { %v253_v44 = vmul.f32 0.5, %v252_v43 }
 0x158   : > { %v254_v45 = vsub.f32 1.5, %v253_v44 }
 0x15a   : > { %v255_v46 = vmul.f32 %v407_v41, %v254_v45 }
 0x15c   : > { %v256_v47 = vmul.f32 %v255_v46, %v249_v40 }
 0x15e   : > { %v258_v49 = vsel %vm257_vm0, %v249_v40, %v256_v47 }
 0x15f   : > { %v261_v50 = vsel %vm259_vm1, %v260_v48, %v258_v49 }
 0x160   : > { %v262_v51 = vadd.f32 1e-08, %v261_v50 }
 0x162   : > { %408 = vrcp.f32 %v262_v51  ;;  %v274_v55 = vand.u32 2147483648, %v262_v51  ;;  %v272_v57 = vand.u32 2147483647, %v262_v51  ;;  %vm268_vm3 = vweird.f32 %v262_v51 }
 0x164   : > { %v275_v59 = vor.u32 1.1754944e-38, %v274_v55  ;;  %vm273_vm5 = vcmp.eq.f32.partialorder %v272_v57, 8.507059e+37 }
 0x168   : > { %v409_v52 = vpop.eup %408 }
 0x169   : > { %v264_v53 = vmul.f32 %v409_v52, %v262_v51  ;;  %vm269_vm2 = vweird.f32 %v409_v52 }
 0x16a   : > { %vm270_vm4 = vmor %vm268_vm3, %vm269_vm2 }
 0x16b   : > { %v265_v54 = vsub.f32 1.0, %v264_v53 }
 0x16d   : > { %v266_v56 = vmul.f32 %v409_v52, %v265_v54 }
 0x16f   : > { %v267_v58 = vadd.f32 %v409_v52, %v266_v56 }
 0x171   : > { %v271_v60 = vsel %vm270_vm4, %v409_v52, %v267_v58 }
 0x172   : > { %v276_v61 = vsel %vm273_vm5, %v275_v59, %v271_v60 }
 0x173   : > { %v277_v62 = vmul.f32 %v276_v61, %v245_v38 }
 0x175   : > { %278 = vst [vmem:[%s163_s29] sm:$0xff] %v277_v62 }
 0x176   : > { %437 = shalt.err (!%p434_p3)
}
 0x177   : > { %366 = dma.vmem_to_hbm [thread:$0]  (%p532_p5), %s293_s30, 128, %s295_s4, %s280_s16  }
 0x178 PF: > { %p372_p4 = scmp.ge.s32.totalorder %s472_s15, 2  ;;  %s306_s17 = sand.u32 1, %s460_s12  }
 0x179   : > { %s307_s19 = scalar_lea.sflag [#allocation3], %s306_s17 }
 0x17a   : > { %p369_p7 = pnand %p372_p4, %p536_p6 }
 0x17c   : > { %p370_p8 = pneg %p369_p7 }
 0x17e   : > { %455 = dma.done.wait (%p370_p8), %s307_s19, 128  }
 0x17f   : > { %457 = vsyncadd (%p370_p8), %s307_s19, 4294967168  ;;  %p13_p9 = scmp.ge.s32.totalorder %s519_s18, 4   ;;  %s684_s12 = smov %s464_s13 }
 0x180   : > { %s685_s13 = smov %s468_s14  ;;  %s686_s14 = smov %s530_s21 }
 0x181   : > { %s687_s15 = smov %s519_s18  ;;  %15 = sbr.rel (!%p13_p9) target bundleno = 3 (0x3), region = 67 }
 0x186   :  { %313 = vsyncpa [#allocation3], 1 }
 0x187   :  { %315 = vsyncpa [#allocation3 + $0x1], 1 }

</bundles_post_ra>
